<compile_context>
chip_gen: v6e
topology: v6e:2x2x1
jax: 0.10.0
libtpu: 0.0.40
codegen_flags: <defaults>
</compile_context>

<pallas_src>
import numpy as np
import jax
import jax.numpy as jnp
from jax.experimental import pallas as pl
from jax.experimental.pallas import tpu as pltpu


def _make_ib_gather_kernel(num_selected: int, ring: int):
    """Build the gather kernel for a static number of selected channels.

    Kernel args:
      idx_ref: (K,) int32 in SMEM — selected channel indices.
      x_hbm:   (N, C, HW) input, left in HBM (memory_space=pl.ANY).
      o_hbm:   (N, K, HW) output, left in HBM (memory_space=pl.ANY).
      sem:     (ring,) DMA semaphores — bounds DMAs in flight.
    """

    def kernel(idx_ref, x_hbm, o_hbm, sem):
        def chan_copy(dst_k, src_c, slot):
            # One strided HBM->HBM DMA moving the full (N, 1, HW) slab of a channel.
            return pltpu.make_async_copy(
                x_hbm.at[:, pl.ds(src_c, 1), :],
                o_hbm.at[:, pl.ds(dst_k, 1), :],
                sem.at[slot],
            )

        @pl.loop(0, num_selected)
        def _(k):
            slot = k % ring

            @pl.when(k >= ring)
            def _():
                # Retire the copy issued `ring` iterations ago on this slot
                # (same shape as every copy, so the wait amount matches).
                chan_copy(0, 0, slot).wait()

            chan_copy(k, idx_ref[k], slot).start()

        # Drain: ring <= num_selected, so every slot has exactly one outstanding copy.
        @pl.loop(0, ring)
        def _(slot):
            chan_copy(0, 0, slot).wait()

    return kernel


def information_bottleneck_forward(x, mask, masking=False):
    """JAX/Pallas equivalent of InformationBottleneck.forward.

    NOTE: `mask` must be a concrete (host) value — mirrors the PyTorch module,
    which calls np.where(self.mask == 1) on host data.
    """
    if masking:
        return x

    N, C, H, W = x.shape
    HW = H * W

    # mirrors `num = np.where(self.mask == 1)` — exact compare on a {0.0, 1.0} mask
    idx = np.where(np.asarray(mask) == 1)[0].astype(np.int32)
    K = int(idx.shape[0])
    if K == 0:  # no selected channels -> empty (N, 0) output, no kernel launch
        return jnp.zeros((N, 0), dtype=x.dtype)

    ring = min(K, 8)  # DMA-semaphore ring depth (bounds outstanding DMAs)
    x3 = x.reshape(N, C, HW)  # free reshape: lane-dense contiguous rows per channel

    itemsize = jnp.dtype(x.dtype).itemsize
    gathered = pl.pallas_call(
        _make_ib_gather_kernel(K, ring),
        out_shape=jax.ShapeDtypeStruct((N, K, HW), x.dtype),
        in_specs=[
            pl.BlockSpec(memory_space=pltpu.SMEM),  # idx: cheap scalar-indexed reads
            pl.BlockSpec(memory_space=pl.ANY),      # x stays in HBM (no auto-DMA)
        ],
        out_specs=pl.BlockSpec(memory_space=pl.ANY),  # out written directly in HBM
        scratch_shapes=[pltpu.SemaphoreType.DMA((ring,))],
        cost_estimate=pl.CostEstimate(
            flops=0,
            transcendentals=0,
            bytes_accessed=2 * N * K * HW * itemsize + K * 4,
        ),
    )(jnp.asarray(idx, dtype=jnp.int32), x3)

    # matches masked_x[:, num].view(N, -1): flatten selected channels per batch row
    return gathered.reshape(N, -1)


if __name__ == "__main__":
    key = jax.random.PRNGKey(0)
    N, C, H, W = 2, 4, 16, 16

    x = jax.random.normal(key, (N, C, H, W), dtype=jnp.float32)

    # Deterministic parameter init. post_z_mu (shape (dim,)) is declared in __init__
    # but unused by this forward path; kept for parity.
    post_z_mu = jnp.linspace(-1.0, 1.0, C, dtype=jnp.float32)
    mask = jnp.array([1.0, 0.0, 1.0, 1.0], dtype=jnp.float32)

    out = information_bottleneck_forward(x, mask, masking=False)
    out = jax.block_until_ready(out)

    # pure-JAX/numpy reference for correctness
    sel = np.where(np.asarray(mask) == 1)[0]
    ref = (np.asarray(x) * np.asarray(mask).reshape(1, C, 1, 1))[:, sel].reshape(N, -1)
    assert out.shape == (N, sel.size * H * W), out.shape
    np.testing.assert_allclose(np.asarray(out), ref, rtol=1e-6, atol=1e-6)

    # masking=True path: identity
    ident = jax.block_until_ready(information_bottleneck_forward(x, mask, masking=True))
    np.testing.assert_allclose(np.asarray(ident), np.asarray(x))

    # all-zero mask edge case: empty (N, 0) result, no kernel launch
    empty = information_bottleneck_forward(x, jnp.zeros((C,), jnp.float32), masking=False)
    assert empty.shape == (N, 0), empty.shape

    print("KERNEL_OK")
</pallas_src>

<mosaic_0001>
module attributes {stable_mosaic.version = 11 : i64} {
  func.func @kernel(%arg0: memref<3xi32, #tpu.memory_space<smem>>, %arg1: memref<2x4x256xf32, #tpu.memory_space<any>>, %arg2: memref<2x3x256xf32, #tpu.memory_space<any>>, %arg3: memref<3x!tpu.dma_semaphore, #tpu.memory_space<semaphore_mem>>) attributes {dimension_semantics = [], scalar_prefetch = 0 : i64, scratch_operands = 1 : i64, tpu.core_type = #tpu.core_type<tc>} {
    %c0_i32 = arith.constant 0 : i32
    %c3_i32 = arith.constant 3 : i32
    %0 = arith.addi %c0_i32, %c3_i32 : i32
    %c1_i32 = arith.constant 1 : i32
    scf.for %arg4 = %c0_i32 to %0 step %c1_i32  : i32 {
      %c1_i32_5 = arith.constant 1 : i32
      %2 = arith.muli %arg4, %c1_i32_5 : i32
      %c0_i32_6 = arith.constant 0 : i32
      %3 = arith.addi %c0_i32_6, %2 : i32
      %c3_i32_7 = arith.constant 3 : i32
      %c0_i32_8 = arith.constant 0 : i32
      %4 = arith.cmpi eq, %c3_i32_7, %c0_i32_8 : i32
      %c1_i32_9 = arith.constant 1 : i32
      %5 = arith.select %4, %c1_i32_9, %c3_i32_7 : i32
      %6 = arith.remsi %3, %5 : i32
      %c0_i32_10 = arith.constant 0 : i32
      %7 = arith.cmpi ne, %6, %c0_i32_10 : i32
      %c0_i32_11 = arith.constant 0 : i32
      %8 = arith.cmpi slt, %6, %c0_i32_11 : i32
      %c0_i32_12 = arith.constant 0 : i32
      %9 = arith.cmpi slt, %5, %c0_i32_12 : i32
      %10 = arith.xori %8, %9 : i1
      %11 = arith.andi %10, %7 : i1
      %12 = arith.addi %6, %5 : i32
      %13 = arith.select %11, %12, %6 : i32
      %c3_i32_13 = arith.constant 3 : i32
      %14 = arith.cmpi sge, %3, %c3_i32_13 : i32
      %15 = arith.extui %14 : i1 to i32
      %c0_i32_14 = arith.constant 0 : i32
      %16 = arith.cmpi ne, %15, %c0_i32_14 : i32
      scf.if %16 {
        %c0_i32_19 = arith.constant 0 : i32
        %c0_i32_20 = arith.constant 0 : i32
        %c0_i32_21 = arith.constant 0 : i32
        %23 = tpu.memref_slice %arg1[%c0_i32_19, %c0_i32_20, %c0_i32_21] : memref<2x4x256xf32, #tpu.memory_space<any>> -> memref<2x1x256xf32, #tpu.memory_space<any>>
        %c0_i32_22 = arith.constant 0 : i32
        %c0_i32_23 = arith.constant 0 : i32
        %c0_i32_24 = arith.constant 0 : i32
        %24 = tpu.memref_slice %arg2[%c0_i32_22, %c0_i32_23, %c0_i32_24] : memref<2x3x256xf32, #tpu.memory_space<any>> -> memref<2x1x256xf32, #tpu.memory_space<any>>
        %25 = tpu.memref_slice %arg3[%13] : memref<3x!tpu.dma_semaphore, #tpu.memory_space<semaphore_mem>> -> memref<1x!tpu.dma_semaphore, #tpu.memory_space<semaphore_mem>>
        %26 = tpu.memref_squeeze %25 : memref<1x!tpu.dma_semaphore, #tpu.memory_space<semaphore_mem>> -> memref<!tpu.dma_semaphore, #tpu.memory_space<semaphore_mem>>
        tpu.wait_dma2 semaphore(%26 : memref<!tpu.dma_semaphore, #tpu.memory_space<semaphore_mem>>) src(%23 : memref<2x1x256xf32, #tpu.memory_space<any>>) dst(%24 : memref<2x1x256xf32, #tpu.memory_space<any>>)
      } else {
      }
      %17 = arith.index_cast %3 : i32 to index
      %18 = memref.load %arg0[%17] : memref<3xi32, #tpu.memory_space<smem>>
      %c0_i32_15 = arith.constant 0 : i32
      %c0_i32_16 = arith.constant 0 : i32
      %19 = tpu.memref_slice %arg1[%c0_i32_15, %18, %c0_i32_16] : memref<2x4x256xf32, #tpu.memory_space<any>> -> memref<2x1x256xf32, #tpu.memory_space<any>>
      %c0_i32_17 = arith.constant 0 : i32
      %c0_i32_18 = arith.constant 0 : i32
      %20 = tpu.memref_slice %arg2[%c0_i32_17, %3, %c0_i32_18] : memref<2x3x256xf32, #tpu.memory_space<any>> -> memref<2x1x256xf32, #tpu.memory_space<any>>
      %21 = tpu.memref_slice %arg3[%13] : memref<3x!tpu.dma_semaphore, #tpu.memory_space<semaphore_mem>> -> memref<1x!tpu.dma_semaphore, #tpu.memory_space<semaphore_mem>>
      %22 = tpu.memref_squeeze %21 : memref<1x!tpu.dma_semaphore, #tpu.memory_space<semaphore_mem>> -> memref<!tpu.dma_semaphore, #tpu.memory_space<semaphore_mem>>
      tpu.enqueue_dma source(%19 : memref<2x1x256xf32, #tpu.memory_space<any>>) target(%20 : memref<2x1x256xf32, #tpu.memory_space<any>>) target_semaphore(%22 : memref<!tpu.dma_semaphore, #tpu.memory_space<semaphore_mem>>)
    }
    %c3_i32_0 = arith.constant 3 : i32
    %c0_i32_1 = arith.constant 0 : i32
    %c3_i32_2 = arith.constant 3 : i32
    %1 = arith.addi %c0_i32_1, %c3_i32_2 : i32
    %c1_i32_3 = arith.constant 1 : i32
    scf.for %arg4 = %c0_i32_1 to %1 step %c1_i32_3  : i32 {
      %c1_i32_5 = arith.constant 1 : i32
      %2 = arith.muli %arg4, %c1_i32_5 : i32
      %c0_i32_6 = arith.constant 0 : i32
      %3 = arith.addi %c0_i32_6, %2 : i32
      %c0_i32_7 = arith.constant 0 : i32
      %c0_i32_8 = arith.constant 0 : i32
      %c0_i32_9 = arith.constant 0 : i32
      %4 = tpu.memref_slice %arg1[%c0_i32_7, %c0_i32_8, %c0_i32_9] : memref<2x4x256xf32, #tpu.memory_space<any>> -> memref<2x1x256xf32, #tpu.memory_space<any>>
      %c0_i32_10 = arith.constant 0 : i32
      %c0_i32_11 = arith.constant 0 : i32
      %c0_i32_12 = arith.constant 0 : i32
      %5 = tpu.memref_slice %arg2[%c0_i32_10, %c0_i32_11, %c0_i32_12] : memref<2x3x256xf32, #tpu.memory_space<any>> -> memref<2x1x256xf32, #tpu.memory_space<any>>
      %6 = tpu.memref_slice %arg3[%3] : memref<3x!tpu.dma_semaphore, #tpu.memory_space<semaphore_mem>> -> memref<1x!tpu.dma_semaphore, #tpu.memory_space<semaphore_mem>>
      %7 = tpu.memref_squeeze %6 : memref<1x!tpu.dma_semaphore, #tpu.memory_space<semaphore_mem>> -> memref<!tpu.dma_semaphore, #tpu.memory_space<semaphore_mem>>
      tpu.wait_dma2 semaphore(%7 : memref<!tpu.dma_semaphore, #tpu.memory_space<semaphore_mem>>) src(%4 : memref<2x1x256xf32, #tpu.memory_space<any>>) dst(%5 : memref<2x1x256xf32, #tpu.memory_space<any>>)
    }
    %c3_i32_4 = arith.constant 3 : i32
    return
  }
}

</mosaic_0001>

<bundles_post_ra>
// kernel: tpu_custom_call.1
= control target key start
LH: loop header
LB: loop body
LE: loop exit
PB: predicated region body
PF: predicated region fallthrough
CT: control target
= control target key end

     0   :  { %7 = vsyncpa [#allocation4], 0  ;;  %s207_s9 = smov [#allocation3]   ;;  %s263_s0 = inlined_call_operand.hbm [shape: s32[3], index: 0, kind: input, shape index: {}]   ;;  %s264_s1 = inlined_call_operand.hbm [shape: f32[2,4,256], index: 1, kind: input, shape index: {}]   ;;  %s265_s2 = inlined_call_operand.vmem [shape: f32[2,3,256], index: 2, kind: output, shape index: {}]  }
   0x1   :  { %15 = dma.hbm_to_smem %s263_s0, 16, %s207_s9, [#allocation4]  }
   0x2   :  { %191 = dma.done.wait [#allocation4], 16  }
   0x3   :  { %192 = vsyncadd [#allocation4], 4294967280 }
   0x4   :  { %19 = sfence }
   0x5   :  { %s228_s12 = smov 0  }
   0x6 LB: > { %s27_s13 = ssub.s32 0, %s201_s12  ;;  %p130_p0 = scmp.ge.s32.totalorder %s201_s12, 3  ;;  %s201_s12 = sphi %s228_s12, %s25_s12  }
   0x7   : > { %s118_s14 = smin.u32 %s201_s12, %s27_s13  ;;  %p26_p1 = scmp.lt.s32.totalorder %s201_s12, 0 }
   0x8   : > { %151 = sdivrem.u32 %s118_s14, 3 }
  0x11   : > { %s152_s0 = spop.drf %151 }
  0x12   : > { %s31_s15 = ssub.s32 0, %s152_s0 }
  0x13   : > { %s267_s15 = smov (!%p26_p1, %s31_s15), %s152_s0 }
  0x14   : > { %p120_p2 = scmp.lt.s32.totalorder %s267_s15, 0  ;;  %s37_s16 = sadd.s32 3, %s267_s15 }
  0x16   : > { %s269_s16 = smov (!%p120_p2, %s37_s16), %s267_s15 }
  0x17   : > { %s237_s17 = scalar_lea.sflag [#allocation2], %s269_s16 }
  0x18   : > { %194 = dma.done.wait (%p130_p0), %s237_s17, 64 }
  0x19   : > { %196 = vsyncadd (%p130_p0), %s237_s17, 4294967232  ;;  %s55_s18 = sshrl.u32 %s201_s12, 2  ;;  %s56_s19 = sand.u32 3, %s201_s12  }
  0x1a   : > { %s48_s20 = sld [smem:[#allocation3 + %s201_s12]]  ;;  %s124_s21 = sshll.u32 %s55_s18, 3 }
  0x1b   : > { %s58_s22 = sadd.s32 %s124_s21, %s56_s19  ;;  %s163_s10 = scalar_lea.hbm %s264_s1, 256 }
  0x1c   : > { %s59_s25 = scalar_lea.vmem %s265_s2, %s58_s22 }
  0x1d   : > { %s62_s26 = sshll.u32 %s59_s25, 4  ;;  %s63_s26 = int_to_ptr.vmem [resolvable:$true] %s62_s26 }
  0x20   : > { %s49_s27 = sshrl.u32 %s48_s20, 2  ;;  %s50_s28 = sand.u32 3, %s48_s20  }
  0x21   : > { %s122_s29 = sshll.u32 %s49_s27, 3 }
  0x22   : > { %s52_s30 = sadd.s32 %s122_s29, %s50_s28 }
  0x23   : > { %s123_s3 = sshll.u32 %s52_s30, 4 }
  0x24   : > { %s54_s6 = scalar_lea.hbm %s264_s1, %s123_s3 }
  0x25   : > { %s161_s7 = scalar_lea.hbm %s54_s6, 64  ;;  %p164_p4 = scmp.lt.s32.totalorder %s54_s6, %s264_s1 }
  0x26   : > { %p162_p3 = scmp.ne.s32.totalorder %s54_s6, %s161_s7  ;;  %p165_p5 = scmp.lt.s32.totalorder %s163_s10, %s161_s7 }
  0x28   : > { %p166_p6 = por %p165_p5, %p164_p4 }
  0x2a   : > { %p167_p7 = pnand %p166_p6, %p162_p3 }
  0x2c   : > { %170 = shalt.err (!%p167_p7)  }
  0x2d   : > { %s171_s14 = scalar_lea.vmem %s63_s26, 64  ;;  %s173_s16 = sshll.u32 %s265_s2, 4  ;;  %s174_s16 = int_to_ptr.vmem [resolvable:$false] %s173_s16 }
  0x2e   : > { %p172_p8 = scmp.ne.s32.totalorder %s63_s26, %s171_s14  ;;  %s175_s18 = scalar_lea.vmem %s174_s16, 256 }
  0x2f   : > { %p176_p9 = scmp.lt.s32.totalorder %s63_s26, %s174_s16  ;;  %p177_p10 = scmp.lt.s32.totalorder %s175_s18, %s171_s14 }
  0x31   : > { %p178_p11 = por %p177_p10, %p176_p9 }
  0x33   : > { %p179_p12 = pnand %p178_p11, %p172_p8 }
  0x35   : > { %182 = shalt.err (!%p179_p12)  }
  0x36   : > { %s208_s19 = smov 64   ;;  %s209_s20 = smov 1  }
  0x37   : > { %65 = dma.hbm_to_vmem [thread:$0]  %s54_s6, 64, %s63_s26, %s237_s17, %s208_s19, %s208_s19, %s209_s20 }
  0x38   : > { %s25_s12 = sadd.s32 1, %s201_s12  }
  0x39   : > { %p22_p13 = scmp.ge.s32.totalorder %s25_s12, 3  }
  0x3a   :  { %s203_s21 = smov (%p22_p13), 0  }
  0x3b   :  { %24 = sbr.rel (!%p22_p13) target bundleno = 6 (0x6), region = 45 }
  0x40 LB: > { %s72_s22 = scalar_lea.sflag [#allocation2], %s205_s21  ;;  %s205_s21 = sphi %s203_s21, %s71_s21  }
  0x41   : > { %197 = dma.done.wait %s72_s22, 64 }
  0x42   : > { %198 = vsyncadd %s72_s22, 4294967232  ;;  %s71_s21 = sadd.s32 1, %s205_s21  }
  0x43   : > { %p68_p0 = scmp.ge.s32.totalorder %s71_s21, 3  }
  0x45   :  { %70 = sbr.rel (!%p68_p0) target bundleno = 64 (0x40), region = 56 }
  0x4a   :  { %77 = vsyncpa [#allocation4], 1 }
  0x4b   :  { %78 = vsyncmov [#allocation2] }
  0x4e   :  { %s79_s17 = vpop.sfrf %78 }
  0x4f   :  { %p125_p1 = scmp.ne.s32.totalorder %s79_s17, 0 }
  0x51   :  { %83 = shalt.err (%p125_p1)  }
  0x52   :  { %85 = vsyncmov [#allocation2 + $0x1] }
  0x55   :  { %s86_s23 = vpop.sfrf %85 }
  0x56   :  { %p126_p2 = scmp.ne.s32.totalorder %s86_s23, 0 }
  0x58   :  { %90 = shalt.err (%p126_p2)  }
  0x59   :  { %92 = vsyncmov [#allocation2 + $0x2] }
  0x5c   :  { %s93_s1 = vpop.sfrf %92 }
  0x5d   :  { %p127_p3 = scmp.ne.s32.totalorder %s93_s1, 0 }
  0x5f   :  { %97 = shalt.err (%p127_p3)  }

</bundles_post_ra>
